<compile_context>
chip_gen: v7x
topology: tpu7x:2x2x1
jax: 0.10.0
libtpu: 0.0.40
codegen_flags: <defaults>
</compile_context>

<pallas_src>
import jax
import jax.numpy as jnp
from jax.experimental import pallas as pl
from jax.experimental.pallas import tpu as pltpu


def _copy_kernel(x_ref, o_ref):
    # Hot path of SRM_UNet.forward — identity (see TODO above).
    o_ref[...] = x_ref[...]


def _packed_sublane_multiple(dtype) -> int:
    """Sublane multiple for packed dtypes: 8 for f32, 16 for bf16, 32 for i8."""
    itemsize = jnp.dtype(dtype).itemsize
    if itemsize >= 4:
        return 8
    return 8 * (4 // itemsize)


def _flat_2d_shape(total: int):
    """Pick a lane-dense (rows, lanes) factorization of `total`.

    Prefers wide lane dims (multiple of 128) while keeping >= 8 rows so both
    sublanes and lanes of each vreg are fully used.  Returns None if no
    128-multiple divides `total` (fallback path keeps the true last dim).
    """
    for lanes in (1024, 512, 256, 128):
        if total % lanes == 0 and (total // lanes) >= 8:
            return total // lanes, lanes
    for lanes in (1024, 512, 256, 128):
        if total % lanes == 0:
            return total // lanes, lanes
    return None


def _pick_tile_rows(rows: int, lanes: int, itemsize: int, sub: int) -> int:
    """Choose a row-tile size for a (rows, lanes) copy.

    Preference order:
      1. exact divisor of rows, multiple of `sub`, <= ~3 MiB block,
         leaving >= 2 grid steps (v7x megacore sharding, no remainder block),
      2. whole array as one block if it is small and sublane-aligned,
      3. cdiv tiling with a (masked) remainder block.
    """
    cap_bytes = 3 * 1024 * 1024  # 4 double-buffered bufs ~ 12 MiB << 16 MiB (v5e)
    cap_rows = max(sub, (cap_bytes // (lanes * itemsize)) // sub * sub)

    if rows <= sub:
        return rows  # full extent is always a legal block dim

    best = None
    d = sub
    limit = min(cap_rows, rows // 2)
    while d <= limit:
        if rows % d == 0:
            best = d
        d += sub
    if best is not None:
        return best

    if rows % sub == 0 and rows * lanes * itemsize <= cap_bytes:
        return rows

    return min(cap_rows, (rows // sub) * sub)


def _tiled_identity_2d(x2: jax.Array) -> jax.Array:
    rows, lanes = x2.shape
    itemsize = jnp.dtype(x2.dtype).itemsize
    sub = _packed_sublane_multiple(x2.dtype)
    tile_rows = _pick_tile_rows(rows, lanes, itemsize, sub)
    grid = pl.cdiv(rows, tile_rows)

    return pl.pallas_call(
        _copy_kernel,
        out_shape=jax.ShapeDtypeStruct((rows, lanes), x2.dtype),
        grid=(grid,),
        in_specs=[pl.BlockSpec((tile_rows, lanes), lambda i: (i, 0))],
        out_specs=pl.BlockSpec((tile_rows, lanes), lambda i: (i, 0)),
        compiler_params=pltpu.CompilerParams(
            dimension_semantics=("parallel",),
        ),
    )(x2)


@jax.jit
def srm_unet_forward(x: jax.Array) -> jax.Array:
    """Pallas-backed forward pass for SRM_UNet.

    x: (N, C, H, W) array (NCHW, matching the PyTorch module input).
    Returns an array of identical shape/dtype (identity, see TODO above).
    """
    total = x.size
    flat = _flat_2d_shape(total)
    if flat is None:
        # Keep the true last dim (full-extent last block dim is always legal)
        # and tile the flattened leading dims.
        last = x.shape[-1] if x.ndim >= 1 and x.shape[-1] > 0 else 1
        flat = (total // last, last)

    rows, lanes = flat
    x2 = jnp.reshape(x, (rows, lanes))      # free: contiguous bitcast-reshape
    y2 = _tiled_identity_2d(x2)
    return jnp.reshape(y2, x.shape)


if __name__ == "__main__":
    key = jax.random.PRNGKey(0)
    # Small NCHW input consistent with a U-Net style image model.
    x = jax.random.normal(key, (2, 4, 16, 16), dtype=jnp.float32)

    y = srm_unet_forward(x)
    jax.block_until_ready(y)

    # Sanity check: identity semantics, correct shape/dtype.
    assert y.shape == x.shape and y.dtype == x.dtype
    assert bool(jnp.allclose(y, x))

    print("KERNEL_OK")
</pallas_src>

<mosaic_0001>
module attributes {stable_mosaic.version = 11 : i64} {
  func.func @_copy_kernel(%arg0: i32, %arg1: memref<8x256xf32, #tpu.memory_space<vmem>>, %arg2: memref<8x256xf32, #tpu.memory_space<vmem>>) attributes {dimension_semantics = [#tpu.dimension_semantics<parallel>], iteration_bounds = array<i64: 1>, scalar_prefetch = 0 : i64, scratch_operands = 0 : i64, tpu.core_type = #tpu.core_type<tc>, window_params = [{transform_indices = @transform_0, window_bounds = array<i64: 8, 256>}, {transform_indices = @transform_1, window_bounds = array<i64: 8, 256>}]} {
    %c0 = arith.constant 0 : index
    %c0_0 = arith.constant 0 : index
    %0 = vector.load %arg1[%c0, %c0_0] : memref<8x256xf32, #tpu.memory_space<vmem>>, vector<8x256xf32>
    %c0_1 = arith.constant 0 : index
    %c0_2 = arith.constant 0 : index
    %1 = vector.load %arg2[%c0_1, %c0_2] : memref<8x256xf32, #tpu.memory_space<vmem>>, vector<8x256xf32>
    tpu.vector_store %arg2[%c0_1, %c0_2], %0 {strides = array<i32>} : memref<8x256xf32, #tpu.memory_space<vmem>>, vector<8x256xf32>,
    return
  }
  func.func @transform_0(%arg0: i32) -> (i32, i32) {
    %c0_i32 = arith.constant 0 : i32
    %c0_i32_0 = arith.constant 0 : i32
    return %arg0, %c0_i32 : i32, i32
  }
  func.func @transform_1(%arg0: i32) -> (i32, i32) {
    %c0_i32 = arith.constant 0 : i32
    %c0_i32_0 = arith.constant 0 : i32
    return %arg0, %c0_i32 : i32, i32
  }
}

</mosaic_0001>

<bundles_post_ra>
// kernel: srm_unet_forward.1
= control target key start
LH: loop header
LB: loop body
LE: loop exit
PB: predicated region body
PF: predicated region fallthrough
CT: control target
= control target key end

     0   :  { %s38_s0 = inlined_call_operand.vmem [shape: f32[8,256], index: 0, kind: input, shape index: {}]   ;;  %s39_s1 = inlined_call_operand.vmem [shape: f32[8,256], index: 1, kind: output, shape index: {}]  }
   0x1   :  { %v8_v0 = vld [vmem:[%s38_s0] sm:$0xff]  ;;  %v9_v1 = vld [vmem:[%s38_s0 + $0x8] sm:$0xff] }
   0x2   :  { %10 = vst [vmem:[%s39_s1] sm:$0xff] %v8_v0  ;;  %11 = vst [vmem:[%s39_s1 + $0x8] sm:$0xff] %v9_v1 }

</bundles_post_ra>
